<compile_context>
chip_gen: v7x
topology: tpu7x:2x2x1
jax: 0.10.0
libtpu: 0.0.40
codegen_flags: <defaults>
</compile_context>

<pallas_src>
import jax
import jax.numpy as jnp
from jax.experimental import pallas as pl
from jax.experimental.pallas import tpu as pltpu

# ---------------- model sizes (small, consistent with the module) ----------------
HIDDEN = 32        # hidden_size
EMBED = 32         # embedding_size
VOCAB = 50         # vocabulary_size
BATCH = 2
SEQLEN = 8
FC1 = 100
FC1_PAD = 128      # lane-dense padding of the first FC layer
NCLASS = 6

# ---------------- weight-slab layout (rows x 128 lanes, f32) ----------------
VPAD = 56          # VOCAB padded up to a multiple of 8 sublanes
R_XPROJ = 0        # rows [  0,  56): per-token input projection (bias folded, g cols x2)
R_WHH = 56         # rows [ 56,  88): reverse-dir recurrent weights, transposed (g cols x2)
R_W1 = 88          # rows [ 88, 120): output_layer_1 weight^T, zero-padded 100 -> 128
R_BIAS = 120       # row 120 = b1 (padded), row 121 = b2 (padded); rows 122..127 zero
R_W2 = 128         # rows [128, 256): output_layer_2 weight^T, zero-padded to (128, 128)
SLAB_ROWS = 256

# ---------------- advisory cost estimate (latency-bound custom call) ----------------
_FLOPS = (2 * BATCH * SEQLEN * VPAD * 4 * HIDDEN            # one-hot gather matmul
          + SEQLEN * 2 * BATCH * HIDDEN * 4 * HIDDEN        # recurrence
          + 2 * BATCH * HIDDEN * FC1_PAD                    # FC1
          + 2 * BATCH * FC1_PAD * FC1_PAD)                  # FC2 (lane-dense padded)
_TRANSCENDENTALS = SEQLEN * (BATCH * 4 * HIDDEN + BATCH * HIDDEN)
_BYTES = BATCH * SEQLEN * 4 + SLAB_ROWS * 128 * 4 + BATCH * 128 * 4


# ---------------- Pallas kernel ----------------
def lstm_baseline_kernel(ids_ref, slab_ref, out_ref):
    # ids_ref : (T*B, 1) int32, time-major (row t*B + b <-> token (b, t)), VMEM
    # slab_ref: (256, 128) f32 packed weights, VMEM
    # out_ref : (B, 128) f32 lane-dense output (first NCLASS lanes are real)
    B, T, H = BATCH, SEQLEN, HIDDEN

    # --- token gather as ONE MXU one-hot matmul, off the recurrence chain ---
    ids = ids_ref[...]                                              # (T*B, 1) int32
    vocab_iota = jax.lax.broadcasted_iota(jnp.int32, (T * B, VPAD), 1)
    onehot = (vocab_iota == ids).astype(jnp.float32)                # (16, 56); OOB id -> zero row
    xw_all = jnp.dot(onehot, slab_ref[R_XPROJ:R_XPROJ + VPAD, :],
                     preferred_element_type=jnp.float32)            # (16, 128)

    whh = slab_ref[R_WHH:R_WHH + H, :]                              # (32, 128), vreg-resident

    h = jnp.zeros((B, H), jnp.float32)
    c = jnp.zeros((B, H), jnp.float32)

    # Reverse-direction recurrence (the only one feeding hidden_state[-1]),
    # statically unrolled over t = T-1, ..., 0.
    for t in range(T - 1, -1, -1):
        xw_t = xw_all[t * B:(t + 1) * B, :]                         # static sublane slice (B, 128)
        gates = xw_t + jnp.dot(h, whh, preferred_element_type=jnp.float32)

        # One full-vreg sigmoid covers all four gates; the g-gate columns of
        # xproj/W_hh^T were pre-scaled by 2 host-side so tanh(z) == 2*sigmoid(2z) - 1.
        s = jax.nn.sigmoid(gates)                                   # EUP push #1
        i_g = s[:, 0 * H:1 * H]
        f_g = s[:, 1 * H:2 * H]
        g_g = 2.0 * s[:, 2 * H:3 * H] - 1.0                         # == tanh(g preactivation)
        o_g = s[:, 3 * H:4 * H]

        c = f_g * c + i_g * g_g
        h = o_g * jnp.tanh(c)                                       # EUP push #2

    # --- output head: relu(Linear 32 -> 128-padded-100) -> Linear -> (B, 128) lane-dense ---
    bias_blk = slab_ref[R_BIAS:R_BIAS + 8, :]                       # aligned (8, 128) load
    b1 = bias_blk[0:1, :]
    b2 = bias_blk[1:2, :]
    z1 = jnp.dot(h, slab_ref[R_W1:R_W1 + H, :], preferred_element_type=jnp.float32) + b1
    z1 = jnp.maximum(z1, 0.0)
    out_ref[...] = jnp.dot(z1, slab_ref[R_W2:R_W2 + FC1_PAD, :],
                           preferred_element_type=jnp.float32) + b2


# ---------------- wrapper ----------------
def _vmem_spec():
    return pl.BlockSpec(memory_space=pltpu.MemorySpace.VMEM)


@jax.jit
def lstm_baseline_forward(input_ids, params):
    # Time-major id column: row t*B + b corresponds to token (b, t); feeds the in-kernel
    # one-hot gather so the per-step slice is a contiguous 2-row sublane slice.
    ids_tm = input_ids.astype(jnp.int32).T.reshape(SEQLEN * BATCH, 1)
    out_pad = pl.pallas_call(
        lstm_baseline_kernel,
        out_shape=jax.ShapeDtypeStruct((BATCH, 128), jnp.float32),   # lane-dense output
        in_specs=[_vmem_spec(), _vmem_spec()],                       # ids + single weight slab
        out_specs=_vmem_spec(),
        cost_estimate=pl.CostEstimate(
            flops=_FLOPS, transcendentals=_TRANSCENDENTALS, bytes_accessed=_BYTES),
    )(ids_tm, params["slab"])
    return out_pad[:, :NCLASS]


# ---------------- deterministic parameter init (PyTorch-style uniform) ----------------
def init_params(key):
    ks = jax.random.split(key, 13)
    H, E = HIDDEN, EMBED
    k_lstm = 1.0 / jnp.sqrt(H)

    def u(k, shape, bound):
        return jax.random.uniform(k, shape, jnp.float32, -bound, bound)

    # Embedding: N(0, 1), padding_idx=0 zeroed.
    emb = jax.random.normal(ks[0], (VOCAB, E), jnp.float32)
    emb = emb.at[0].set(0.0)

    # Forward-direction LSTM weights exist in the module but never reach the output head
    # (hidden_state[-1] is the reverse direction's final state); kept only for fidelity.
    _wih_f = u(ks[1], (4 * H, E), k_lstm)
    _whh_f = u(ks[2], (4 * H, H), k_lstm)
    _b_f = u(ks[3], (4 * H,), k_lstm)

    # Reverse-direction LSTM weights (the ones that matter).
    wih_b = u(ks[4], (4 * H, E), k_lstm)
    whh_b = u(ks[5], (4 * H, H), k_lstm)
    b_b = u(ks[6], (4 * H,), k_lstm) + u(ks[7], (4 * H,), k_lstm)   # b_ih + b_hh

    # output_layer_1: Linear(H, 100); output_layer_2: Linear(100, 6).
    k1 = 1.0 / jnp.sqrt(H)
    w1 = u(ks[8], (FC1, H), k1)
    b1 = u(ks[9], (FC1,), k1)
    k2 = 1.0 / jnp.sqrt(FC1)
    w2 = u(ks[10], (NCLASS, FC1), k2)
    b2 = u(ks[11], (NCLASS,), k2)

    wih_b_T = wih_b.T                        # (E, 4H)
    whh_b_T = whh_b.T                        # (H, 4H)
    b_b_row = b_b.reshape(1, -1)             # (1, 4H)

    # Kernel-side precomputations (mathematically equivalent refactors):
    # per-token input projection with bias folded in.
    xproj = emb @ wih_b_T + b_b_row          # (VOCAB, 4H)

    # Single-sigmoid trick: pre-scale g-gate columns by 2 so tanh(z) = 2*sigmoid(2z) - 1.
    xproj_k = xproj.at[:, 2 * H:3 * H].multiply(2.0)
    whh_k = whh_b_T.at[:, 2 * H:3 * H].multiply(2.0)

    # Pack everything the kernel needs into one (256, 128) f32 slab -> a single DMA.
    slab = jnp.zeros((SLAB_ROWS, 128), jnp.float32)
    slab = slab.at[R_XPROJ:R_XPROJ + VOCAB, :].set(xproj_k)
    slab = slab.at[R_WHH:R_WHH + H, :].set(whh_k)
    slab = slab.at[R_W1:R_W1 + H, :FC1].set(w1.T)
    slab = slab.at[R_BIAS, :FC1].set(b1)
    slab = slab.at[R_BIAS + 1, :NCLASS].set(b2)
    slab = slab.at[R_W2:R_W2 + FC1, :NCLASS].set(w2.T)

    return {
        # raw params (used by the pure-JAX reference)
        "embedding": emb,
        "wih_b_T": wih_b_T, "whh_b_T": whh_b_T, "b_b": b_b_row,
        "w1_T": w1.T, "b1": b1.reshape(1, -1), "w2_T": w2.T, "b2": b2.reshape(1, -1),
        # kernel param: single packed weight slab
        "slab": slab,
    }


# ---------------- pure-JAX reference (correctness sanity check) ----------------
def reference_forward(input_ids, params):
    emb = jnp.take(params["embedding"], input_ids, axis=0)   # (B, T, E)
    B = input_ids.shape[0]
    H = HIDDEN

    h = jnp.zeros((B, H), jnp.float32)
    c = jnp.zeros((B, H), jnp.float32)
    for t in range(SEQLEN - 1, -1, -1):      # reverse direction == hidden_state[-1]
        x_t = emb[:, t, :]
        gates = x_t @ params["wih_b_T"] + h @ params["whh_b_T"] + params["b_b"]
        i = jax.nn.sigmoid(gates[:, 0 * H:1 * H])
        f = jax.nn.sigmoid(gates[:, 1 * H:2 * H])
        g = jnp.tanh(gates[:, 2 * H:3 * H])
        o = jax.nn.sigmoid(gates[:, 3 * H:4 * H])
        c = f * c + i * g
        h = o * jnp.tanh(c)

    z1 = jnp.maximum(h @ params["w1_T"] + params["b1"], 0.0)
    return z1 @ params["w2_T"] + params["b2"]


if __name__ == "__main__":
    key = jax.random.PRNGKey(0)
    k_param, k_ids = jax.random.split(key)
    params = init_params(k_param)

    input_text = jax.random.randint(k_ids, (BATCH, SEQLEN), 0, VOCAB, dtype=jnp.int32)

    out = lstm_baseline_forward(input_text, params)
    out = jax.block_until_ready(out)

    ref = reference_forward(input_text, params)
    assert out.shape == (BATCH, NCLASS)
    assert jnp.allclose(out, ref, atol=5e-4, rtol=5e-4), (out, ref)

    print("KERNEL_OK")
</pallas_src>

<mosaic_0001>
module attributes {stable_mosaic.version = 11 : i64} {
  func.func @lstm_baseline_kernel(%arg0: memref<16x1xi32, #tpu.memory_space<vmem>>, %arg1: memref<256x128xf32, #tpu.memory_space<vmem>>, %arg2: memref<2x128xf32, #tpu.memory_space<vmem>>) attributes {dimension_semantics = [], scalar_prefetch = 0 : i64, scratch_operands = 0 : i64, tpu.core_type = #tpu.core_type<tc>} {
    %c0 = arith.constant 0 : index
    %c0_0 = arith.constant 0 : index
    %0 = vector.load %arg0[%c0, %c0_0] : memref<16x1xi32, #tpu.memory_space<vmem>>, vector<16x1xi32>
    %1 = tpu.iota {dimensions = array<i32: 1>} : vector<16x56xi32>
    %2 = vector.broadcast %0 : vector<16x1xi32> to vector<16x56xi32>
    %3 = arith.cmpi eq, %1, %2 : vector<16x56xi32>
    %4 = arith.extui %3 : vector<16x56xi1> to vector<16x56xi32>
    %5 = arith.sitofp %4 : vector<16x56xi32> to vector<16x56xf32>
    %c0_1 = arith.constant 0 : index
    %c0_2 = arith.constant 0 : index
    %6 = vector.load %arg1[%c0_1, %c0_2] : memref<256x128xf32, #tpu.memory_space<vmem>>, vector<56x128xf32>
    %cst = arith.constant dense<0.000000e+00> : vector<16x128xf32>
    %7 = tpu.matmul %5, %6, %cst {dimension_numbers = #tpu.dot_dimension_numbers<[1], [0], [0], [1], [0, 0, 1, 1], [], []>} : vector<16x56xf32>, vector<56x128xf32>, vector<16x128xf32> -> vector<16x128xf32>
    %c56 = arith.constant 56 : index
    %c0_3 = arith.constant 0 : index
    %8 = vector.load %arg1[%c56, %c0_3] : memref<256x128xf32, #tpu.memory_space<vmem>>, vector<32x128xf32>
    %cst_4 = arith.constant 0.000000e+00 : f32
    %9 = vector.broadcast %cst_4 : f32 to vector<2x32xf32>
    %cst_5 = arith.constant 0.000000e+00 : f32
    %10 = vector.broadcast %cst_5 : f32 to vector<2x32xf32>
    %11 = vector.extract_strided_slice %7 {offsets = [14, 0], sizes = [2, 128], strides = [1, 1]} : vector<16x128xf32> to vector<2x128xf32>
    %cst_6 = arith.constant dense<0.000000e+00> : vector<2x128xf32>
    %12 = tpu.matmul %9, %8, %cst_6 {dimension_numbers = #tpu.dot_dimension_numbers<[1], [0], [0], [1], [0, 0, 1, 1], [], []>} : vector<2x32xf32>, vector<32x128xf32>, vector<2x128xf32> -> vector<2x128xf32>
    %13 = arith.addf %11, %12 : vector<2x128xf32>
    %14 = arith.negf %13 : vector<2x128xf32>
    %15 = math.exp %14 : vector<2x128xf32>
    %cst_7 = arith.constant 1.000000e+00 : f32
    %16 = vector.broadcast %cst_7 : f32 to vector<2x128xf32>
    %17 = arith.addf %16, %15 : vector<2x128xf32>
    %18 = arith.divf %16, %17 : vector<2x128xf32>
    %19 = vector.extract_strided_slice %18 {offsets = [0, 0], sizes = [2, 32], strides = [1, 1]} : vector<2x128xf32> to vector<2x32xf32>
    %20 = vector.extract_strided_slice %18 {offsets = [0, 32], sizes = [2, 32], strides = [1, 1]} : vector<2x128xf32> to vector<2x32xf32>
    %21 = vector.extract_strided_slice %18 {offsets = [0, 64], sizes = [2, 32], strides = [1, 1]} : vector<2x128xf32> to vector<2x32xf32>
    %cst_8 = arith.constant 2.000000e+00 : f32
    %22 = vector.broadcast %cst_8 : f32 to vector<2x32xf32>
    %23 = arith.mulf %22, %21 : vector<2x32xf32>
    %cst_9 = arith.constant 1.000000e+00 : f32
    %24 = vector.broadcast %cst_9 : f32 to vector<2x32xf32>
    %25 = arith.subf %23, %24 : vector<2x32xf32>
    %26 = vector.extract_strided_slice %18 {offsets = [0, 96], sizes = [2, 32], strides = [1, 1]} : vector<2x128xf32> to vector<2x32xf32>
    %27 = arith.mulf %20, %10 : vector<2x32xf32>
    %28 = arith.mulf %19, %25 : vector<2x32xf32>
    %29 = arith.addf %27, %28 : vector<2x32xf32>
    %30 = math.tanh %29 : vector<2x32xf32>
    %31 = arith.mulf %26, %30 : vector<2x32xf32>
    %32 = vector.extract_strided_slice %7 {offsets = [12, 0], sizes = [2, 128], strides = [1, 1]} : vector<16x128xf32> to vector<2x128xf32>
    %cst_10 = arith.constant dense<0.000000e+00> : vector<2x128xf32>
    %33 = tpu.matmul %31, %8, %cst_10 {dimension_numbers = #tpu.dot_dimension_numbers<[1], [0], [0], [1], [0, 0, 1, 1], [], []>} : vector<2x32xf32>, vector<32x128xf32>, vector<2x128xf32> -> vector<2x128xf32>
    %34 = arith.addf %32, %33 : vector<2x128xf32>
    %35 = arith.negf %34 : vector<2x128xf32>
    %36 = math.exp %35 : vector<2x128xf32>
    %cst_11 = arith.constant 1.000000e+00 : f32
    %37 = vector.broadcast %cst_11 : f32 to vector<2x128xf32>
    %38 = arith.addf %37, %36 : vector<2x128xf32>
    %39 = arith.divf %37, %38 : vector<2x128xf32>
    %40 = vector.extract_strided_slice %39 {offsets = [0, 0], sizes = [2, 32], strides = [1, 1]} : vector<2x128xf32> to vector<2x32xf32>
    %41 = vector.extract_strided_slice %39 {offsets = [0, 32], sizes = [2, 32], strides = [1, 1]} : vector<2x128xf32> to vector<2x32xf32>
    %42 = vector.extract_strided_slice %39 {offsets = [0, 64], sizes = [2, 32], strides = [1, 1]} : vector<2x128xf32> to vector<2x32xf32>
    %cst_12 = arith.constant 2.000000e+00 : f32
    %43 = vector.broadcast %cst_12 : f32 to vector<2x32xf32>
    %44 = arith.mulf %43, %42 : vector<2x32xf32>
    %cst_13 = arith.constant 1.000000e+00 : f32
    %45 = vector.broadcast %cst_13 : f32 to vector<2x32xf32>
    %46 = arith.subf %44, %45 : vector<2x32xf32>
    %47 = vector.extract_strided_slice %39 {offsets = [0, 96], sizes = [2, 32], strides = [1, 1]} : vector<2x128xf32> to vector<2x32xf32>
    %48 = arith.mulf %41, %29 : vector<2x32xf32>
    %49 = arith.mulf %40, %46 : vector<2x32xf32>
    %50 = arith.addf %48, %49 : vector<2x32xf32>
    %51 = math.tanh %50 : vector<2x32xf32>
    %52 = arith.mulf %47, %51 : vector<2x32xf32>
    %53 = vector.extract_strided_slice %7 {offsets = [10, 0], sizes = [2, 128], strides = [1, 1]} : vector<16x128xf32> to vector<2x128xf32>
    %cst_14 = arith.constant dense<0.000000e+00> : vector<2x128xf32>
    %54 = tpu.matmul %52, %8, %cst_14 {dimension_numbers = #tpu.dot_dimension_numbers<[1], [0], [0], [1], [0, 0, 1, 1], [], []>} : vector<2x32xf32>, vector<32x128xf32>, vector<2x128xf32> -> vector<2x128xf32>
    %55 = arith.addf %53, %54 : vector<2x128xf32>
    %56 = arith.negf %55 : vector<2x128xf32>
    %57 = math.exp %56 : vector<2x128xf32>
    %cst_15 = arith.constant 1.000000e+00 : f32
    %58 = vector.broadcast %cst_15 : f32 to vector<2x128xf32>
    %59 = arith.addf %58, %57 : vector<2x128xf32>
    %60 = arith.divf %58, %59 : vector<2x128xf32>
    %61 = vector.extract_strided_slice %60 {offsets = [0, 0], sizes = [2, 32], strides = [1, 1]} : vector<2x128xf32> to vector<2x32xf32>
    %62 = vector.extract_strided_slice %60 {offsets = [0, 32], sizes = [2, 32], strides = [1, 1]} : vector<2x128xf32> to vector<2x32xf32>
    %63 = vector.extract_strided_slice %60 {offsets = [0, 64], sizes = [2, 32], strides = [1, 1]} : vector<2x128xf32> to vector<2x32xf32>
    %cst_16 = arith.constant 2.000000e+00 : f32
    %64 = vector.broadcast %cst_16 : f32 to vector<2x32xf32>
    %65 = arith.mulf %64, %63 : vector<2x32xf32>
    %cst_17 = arith.constant 1.000000e+00 : f32
    %66 = vector.broadcast %cst_17 : f32 to vector<2x32xf32>
    %67 = arith.subf %65, %66 : vector<2x32xf32>
    %68 = vector.extract_strided_slice %60 {offsets = [0, 96], sizes = [2, 32], strides = [1, 1]} : vector<2x128xf32> to vector<2x32xf32>
    %69 = arith.mulf %62, %50 : vector<2x32xf32>
    %70 = arith.mulf %61, %67 : vector<2x32xf32>
    %71 = arith.addf %69, %70 : vector<2x32xf32>
    %72 = math.tanh %71 : vector<2x32xf32>
    %73 = arith.mulf %68, %72 : vector<2x32xf32>
    %74 = vector.extract_strided_slice %7 {offsets = [8, 0], sizes = [2, 128], strides = [1, 1]} : vector<16x128xf32> to vector<2x128xf32>
    %cst_18 = arith.constant dense<0.000000e+00> : vector<2x128xf32>
    %75 = tpu.matmul %73, %8, %cst_18 {dimension_numbers = #tpu.dot_dimension_numbers<[1], [0], [0], [1], [0, 0, 1, 1], [], []>} : vector<2x32xf32>, vector<32x128xf32>, vector<2x128xf32> -> vector<2x128xf32>
    %76 = arith.addf %74, %75 : vector<2x128xf32>
    %77 = arith.negf %76 : vector<2x128xf32>
    %78 = math.exp %77 : vector<2x128xf32>
    %cst_19 = arith.constant 1.000000e+00 : f32
    %79 = vector.broadcast %cst_19 : f32 to vector<2x128xf32>
    %80 = arith.addf %79, %78 : vector<2x128xf32>
    %81 = arith.divf %79, %80 : vector<2x128xf32>
    %82 = vector.extract_strided_slice %81 {offsets = [0, 0], sizes = [2, 32], strides = [1, 1]} : vector<2x128xf32> to vector<2x32xf32>
    %83 = vector.extract_strided_slice %81 {offsets = [0, 32], sizes = [2, 32], strides = [1, 1]} : vector<2x128xf32> to vector<2x32xf32>
    %84 = vector.extract_strided_slice %81 {offsets = [0, 64], sizes = [2, 32], strides = [1, 1]} : vector<2x128xf32> to vector<2x32xf32>
    %cst_20 = arith.constant 2.000000e+00 : f32
    %85 = vector.broadcast %cst_20 : f32 to vector<2x32xf32>
    %86 = arith.mulf %85, %84 : vector<2x32xf32>
    %cst_21 = arith.constant 1.000000e+00 : f32
    %87 = vector.broadcast %cst_21 : f32 to vector<2x32xf32>
    %88 = arith.subf %86, %87 : vector<2x32xf32>
    %89 = vector.extract_strided_slice %81 {offsets = [0, 96], sizes = [2, 32], strides = [1, 1]} : vector<2x128xf32> to vector<2x32xf32>
    %90 = arith.mulf %83, %71 : vector<2x32xf32>
    %91 = arith.mulf %82, %88 : vector<2x32xf32>
    %92 = arith.addf %90, %91 : vector<2x32xf32>
    %93 = math.tanh %92 : vector<2x32xf32>
    %94 = arith.mulf %89, %93 : vector<2x32xf32>
    %95 = vector.extract_strided_slice %7 {offsets = [6, 0], sizes = [2, 128], strides = [1, 1]} : vector<16x128xf32> to vector<2x128xf32>
    %cst_22 = arith.constant dense<0.000000e+00> : vector<2x128xf32>
    %96 = tpu.matmul %94, %8, %cst_22 {dimension_numbers = #tpu.dot_dimension_numbers<[1], [0], [0], [1], [0, 0, 1, 1], [], []>} : vector<2x32xf32>, vector<32x128xf32>, vector<2x128xf32> -> vector<2x128xf32>
    %97 = arith.addf %95, %96 : vector<2x128xf32>
    %98 = arith.negf %97 : vector<2x128xf32>
    %99 = math.exp %98 : vector<2x128xf32>
    %cst_23 = arith.constant 1.000000e+00 : f32
    %100 = vector.broadcast %cst_23 : f32 to vector<2x128xf32>
    %101 = arith.addf %100, %99 : vector<2x128xf32>
    %102 = arith.divf %100, %101 : vector<2x128xf32>
    %103 = vector.extract_strided_slice %102 {offsets = [0, 0], sizes = [2, 32], strides = [1, 1]} : vector<2x128xf32> to vector<2x32xf32>
    %104 = vector.extract_strided_slice %102 {offsets = [0, 32], sizes = [2, 32], strides = [1, 1]} : vector<2x128xf32> to vector<2x32xf32>
    %105 = vector.extract_strided_slice %102 {offsets = [0, 64], sizes = [2, 32], strides = [1, 1]} : vector<2x128xf32> to vector<2x32xf32>
    %cst_24 = arith.constant 2.000000e+00 : f32
    %106 = vector.broadcast %cst_24 : f32 to vector<2x32xf32>
    %107 = arith.mulf %106, %105 : vector<2x32xf32>
    %cst_25 = arith.constant 1.000000e+00 : f32
    %108 = vector.broadcast %cst_25 : f32 to vector<2x32xf32>
    %109 = arith.subf %107, %108 : vector<2x32xf32>
    %110 = vector.extract_strided_slice %102 {offsets = [0, 96], sizes = [2, 32], strides = [1, 1]} : vector<2x128xf32> to vector<2x32xf32>
    %111 = arith.mulf %104, %92 : vector<2x32xf32>
    %112 = arith.mulf %103, %109 : vector<2x32xf32>
    %113 = arith.addf %111, %112 : vector<2x32xf32>
    %114 = math.tanh %113 : vector<2x32xf32>
    %115 = arith.mulf %110, %114 : vector<2x32xf32>
    %116 = vector.extract_strided_slice %7 {offsets = [4, 0], sizes = [2, 128], strides = [1, 1]} : vector<16x128xf32> to vector<2x128xf32>
    %cst_26 = arith.constant dense<0.000000e+00> : vector<2x128xf32>
    %117 = tpu.matmul %115, %8, %cst_26 {dimension_numbers = #tpu.dot_dimension_numbers<[1], [0], [0], [1], [0, 0, 1, 1], [], []>} : vector<2x32xf32>, vector<32x128xf32>, vector<2x128xf32> -> vector<2x128xf32>
    %118 = arith.addf %116, %117 : vector<2x128xf32>
    %119 = arith.negf %118 : vector<2x128xf32>
    %120 = math.exp %119 : vector<2x128xf32>
    %cst_27 = arith.constant 1.000000e+00 : f32
    %121 = vector.broadcast %cst_27 : f32 to vector<2x128xf32>
    %122 = arith.addf %121, %120 : vector<2x128xf32>
    %123 = arith.divf %121, %122 : vector<2x128xf32>
    %124 = vector.extract_strided_slice %123 {offsets = [0, 0], sizes = [2, 32], strides = [1, 1]} : vector<2x128xf32> to vector<2x32xf32>
    %125 = vector.extract_strided_slice %123 {offsets = [0, 32], sizes = [2, 32], strides = [1, 1]} : vector<2x128xf32> to vector<2x32xf32>
    %126 = vector.extract_strided_slice %123 {offsets = [0, 64], sizes = [2, 32], strides = [1, 1]} : vector<2x128xf32> to vector<2x32xf32>
    %cst_28 = arith.constant 2.000000e+00 : f32
    %127 = vector.broadcast %cst_28 : f32 to vector<2x32xf32>
    %128 = arith.mulf %127, %126 : vector<2x32xf32>
    %cst_29 = arith.constant 1.000000e+00 : f32
    %129 = vector.broadcast %cst_29 : f32 to vector<2x32xf32>
    %130 = arith.subf %128, %129 : vector<2x32xf32>
    %131 = vector.extract_strided_slice %123 {offsets = [0, 96], sizes = [2, 32], strides = [1, 1]} : vector<2x128xf32> to vector<2x32xf32>
    %132 = arith.mulf %125, %113 : vector<2x32xf32>
    %133 = arith.mulf %124, %130 : vector<2x32xf32>
    %134 = arith.addf %132, %133 : vector<2x32xf32>
    %135 = math.tanh %134 : vector<2x32xf32>
    %136 = arith.mulf %131, %135 : vector<2x32xf32>
    %137 = vector.extract_strided_slice %7 {offsets = [2, 0], sizes = [2, 128], strides = [1, 1]} : vector<16x128xf32> to vector<2x128xf32>
    %cst_30 = arith.constant dense<0.000000e+00> : vector<2x128xf32>
    %138 = tpu.matmul %136, %8, %cst_30 {dimension_numbers = #tpu.dot_dimension_numbers<[1], [0], [0], [1], [0, 0, 1, 1], [], []>} : vector<2x32xf32>, vector<32x128xf32>, vector<2x128xf32> -> vector<2x128xf32>
    %139 = arith.addf %137, %138 : vector<2x128xf32>
    %140 = arith.negf %139 : vector<2x128xf32>
    %141 = math.exp %140 : vector<2x128xf32>
    %cst_31 = arith.constant 1.000000e+00 : f32
    %142 = vector.broadcast %cst_31 : f32 to vector<2x128xf32>
    %143 = arith.addf %142, %141 : vector<2x128xf32>
    %144 = arith.divf %142, %143 : vector<2x128xf32>
    %145 = vector.extract_strided_slice %144 {offsets = [0, 0], sizes = [2, 32], strides = [1, 1]} : vector<2x128xf32> to vector<2x32xf32>
    %146 = vector.extract_strided_slice %144 {offsets = [0, 32], sizes = [2, 32], strides = [1, 1]} : vector<2x128xf32> to vector<2x32xf32>
    %147 = vector.extract_strided_slice %144 {offsets = [0, 64], sizes = [2, 32], strides = [1, 1]} : vector<2x128xf32> to vector<2x32xf32>
    %cst_32 = arith.constant 2.000000e+00 : f32
    %148 = vector.broadcast %cst_32 : f32 to vector<2x32xf32>
    %149 = arith.mulf %148, %147 : vector<2x32xf32>
    %cst_33 = arith.constant 1.000000e+00 : f32
    %150 = vector.broadcast %cst_33 : f32 to vector<2x32xf32>
    %151 = arith.subf %149, %150 : vector<2x32xf32>
    %152 = vector.extract_strided_slice %144 {offsets = [0, 96], sizes = [2, 32], strides = [1, 1]} : vector<2x128xf32> to vector<2x32xf32>
    %153 = arith.mulf %146, %134 : vector<2x32xf32>
    %154 = arith.mulf %145, %151 : vector<2x32xf32>
    %155 = arith.addf %153, %154 : vector<2x32xf32>
    %156 = math.tanh %155 : vector<2x32xf32>
    %157 = arith.mulf %152, %156 : vector<2x32xf32>
    %158 = vector.extract_strided_slice %7 {offsets = [0, 0], sizes = [2, 128], strides = [1, 1]} : vector<16x128xf32> to vector<2x128xf32>
    %cst_34 = arith.constant dense<0.000000e+00> : vector<2x128xf32>
    %159 = tpu.matmul %157, %8, %cst_34 {dimension_numbers = #tpu.dot_dimension_numbers<[1], [0], [0], [1], [0, 0, 1, 1], [], []>} : vector<2x32xf32>, vector<32x128xf32>, vector<2x128xf32> -> vector<2x128xf32>
    %160 = arith.addf %158, %159 : vector<2x128xf32>
    %161 = arith.negf %160 : vector<2x128xf32>
    %162 = math.exp %161 : vector<2x128xf32>
    %cst_35 = arith.constant 1.000000e+00 : f32
    %163 = vector.broadcast %cst_35 : f32 to vector<2x128xf32>
    %164 = arith.addf %163, %162 : vector<2x128xf32>
    %165 = arith.divf %163, %164 : vector<2x128xf32>
    %166 = vector.extract_strided_slice %165 {offsets = [0, 0], sizes = [2, 32], strides = [1, 1]} : vector<2x128xf32> to vector<2x32xf32>
    %167 = vector.extract_strided_slice %165 {offsets = [0, 32], sizes = [2, 32], strides = [1, 1]} : vector<2x128xf32> to vector<2x32xf32>
    %168 = vector.extract_strided_slice %165 {offsets = [0, 64], sizes = [2, 32], strides = [1, 1]} : vector<2x128xf32> to vector<2x32xf32>
    %cst_36 = arith.constant 2.000000e+00 : f32
    %169 = vector.broadcast %cst_36 : f32 to vector<2x32xf32>
    %170 = arith.mulf %169, %168 : vector<2x32xf32>
    %cst_37 = arith.constant 1.000000e+00 : f32
    %171 = vector.broadcast %cst_37 : f32 to vector<2x32xf32>
    %172 = arith.subf %170, %171 : vector<2x32xf32>
    %173 = vector.extract_strided_slice %165 {offsets = [0, 96], sizes = [2, 32], strides = [1, 1]} : vector<2x128xf32> to vector<2x32xf32>
    %174 = arith.mulf %167, %155 : vector<2x32xf32>
    %175 = arith.mulf %166, %172 : vector<2x32xf32>
    %176 = arith.addf %174, %175 : vector<2x32xf32>
    %177 = math.tanh %176 : vector<2x32xf32>
    %178 = arith.mulf %173, %177 : vector<2x32xf32>
    %c120 = arith.constant 120 : index
    %c0_38 = arith.constant 0 : index
    %179 = vector.load %arg1[%c120, %c0_38] : memref<256x128xf32, #tpu.memory_space<vmem>>, vector<8x128xf32>
    %180 = vector.extract_strided_slice %179 {offsets = [0, 0], sizes = [1, 128], strides = [1, 1]} : vector<8x128xf32> to vector<1x128xf32>
    %181 = vector.extract_strided_slice %179 {offsets = [1, 0], sizes = [1, 128], strides = [1, 1]} : vector<8x128xf32> to vector<1x128xf32>
    %c88 = arith.constant 88 : index
    %c0_39 = arith.constant 0 : index
    %182 = vector.load %arg1[%c88, %c0_39] : memref<256x128xf32, #tpu.memory_space<vmem>>, vector<32x128xf32>
    %cst_40 = arith.constant dense<0.000000e+00> : vector<2x128xf32>
    %183 = tpu.matmul %178, %182, %cst_40 {dimension_numbers = #tpu.dot_dimension_numbers<[1], [0], [0], [1], [0, 0, 1, 1], [], []>} : vector<2x32xf32>, vector<32x128xf32>, vector<2x128xf32> -> vector<2x128xf32>
    %184 = vector.broadcast %180 : vector<1x128xf32> to vector<2x128xf32>
    %185 = arith.addf %183, %184 : vector<2x128xf32>
    %cst_41 = arith.constant 0.000000e+00 : f32
    %186 = vector.broadcast %cst_41 : f32 to vector<2x128xf32>
    %187 = arith.maximumf %185, %186 : vector<2x128xf32>
    %c128 = arith.constant 128 : index
    %c0_42 = arith.constant 0 : index
    %188 = vector.load %arg1[%c128, %c0_42] : memref<256x128xf32, #tpu.memory_space<vmem>>, vector<128x128xf32>
    %cst_43 = arith.constant dense<0.000000e+00> : vector<2x128xf32>
    %189 = tpu.matmul %187, %188, %cst_43 {dimension_numbers = #tpu.dot_dimension_numbers<[1], [0], [0], [1], [0, 0, 1, 1], [], []>} : vector<2x128xf32>, vector<128x128xf32>, vector<2x128xf32> -> vector<2x128xf32>
    %190 = vector.broadcast %181 : vector<1x128xf32> to vector<2x128xf32>
    %191 = arith.addf %189, %190 : vector<2x128xf32>
    %c0_44 = arith.constant 0 : index
    %c0_45 = arith.constant 0 : index
    %192 = vector.load %arg2[%c0_44, %c0_45] : memref<2x128xf32, #tpu.memory_space<vmem>>, vector<2x128xf32>
    tpu.vector_store %arg2[%c0_44, %c0_45], %191 {strides = array<i32>} : memref<2x128xf32, #tpu.memory_space<vmem>>, vector<2x128xf32>,
    return
  }
}

</mosaic_0001>

<bundles_post_ra>
// kernel: lstm_baseline_forward.1
= control target key start
LH: loop header
LB: loop body
LE: loop exit
PB: predicated region body
PF: predicated region fallthrough
CT: control target
= control target key end

     0   :  { %7 = vsyncpa [#allocation3], 0  ;;  %s1803_s0 = inlined_call_operand.vmem [shape: s32[16,1], index: 0, kind: input, shape index: {}]   ;;  %s1804_s1 = inlined_call_operand.hbm [shape: f32[256,128], index: 1, kind: input, shape index: {}]   ;;  %s1805_s2 = inlined_call_operand.hbm [shape: f32[2,128], index: 2, kind: output, shape index: {}]  }
   0x1   :  { %8 = vsyncpa [#allocation4], 0  ;;  %s1625_s9 = smov [#allocation2]   ;;  %s1577_s13 = scalar_lea.hbm %s1804_s1, 4096 }
   0x2   :  { %s16_s10 = sshll.u32 %s1625_s9, 4  ;;  %p1578_p0 = scmp.ne.s32.totalorder %s1804_s1, %s1577_s13  ;;  %s17_s10 = int_to_ptr.vmem [resolvable:$true] %s16_s10 }
   0x3   :  { %p1581_p1 = scmp.lt.u32.totalorder %s1577_s13, %s1804_s1 }
   0x5   :  { %p1583_p2 = pnand %p1581_p1, %p1578_p0 }
   0x7   :  { %1586 = shalt.err (!%p1583_p2)
}
   0x8   :  { %s1587_s18 = scalar_lea.vmem %s17_s10, 4096  ;;  %p1592_p4 = scmp.lt.s32.totalorder %s17_s10, %s17_s10 }
   0x9   :  { %p1588_p3 = scmp.ne.s32.totalorder %s17_s10, %s1587_s18  ;;  %p1593_p5 = scmp.lt.s32.totalorder %s1587_s18, %s1587_s18 }
   0xb   :  { %p1594_p6 = por %p1593_p5, %p1592_p4 }
   0xd   :  { %p1595_p7 = pnand %p1594_p6, %p1588_p3 }
   0xf   :  { %1598 = shalt.err (!%p1595_p7)
}
  0x10   :  { %s1626_s19 = smov 128   ;;  %s1627_s20 = smov 8  }
  0x11   :  { %22 = dma.hbm_to_vmem [thread:$0]  %s1804_s1, 4096, %s17_s10, [#allocation3], %s1626_s19, %s1626_s19, %s1627_s20  }
  0x12   :  { %1621 = dma.done.wait [#allocation3], 4096  }
  0x13   :  { %1622 = vsyncadd [#allocation3], 4294963200  ;;  %v1628_v0 = vmov 0   ;;  %v26_v1 = vld [vmem:[%s1803_s0] sm:$0xff]  ;;  %v43_v3 = vld [vmem:[#allocation2 + $0x8] sm:$0xff]  ;;  %v1629_v15 = vmov 0.0|0.0   ;;  %v28_v21 = vlaneseq }
  0x14   :  { %1528 = vset.pattern.permute.xlu0 %v1628_v0  ;;  %v42_v2 = vld [vmem:[#allocation2] sm:$0xff]  ;;  %v44_v4 = vld [vmem:[#allocation2 + $0x10] sm:$0xff]  ;;  %v45_v5 = vld [vmem:[#allocation2 + $0x18] sm:$0xff]  ;;  %1458 = vmatprep.subr.bf16.mxu1 %v1629_v15  ;;  %vm1630_vm0 = vmmov 0   ;;  %v1631_v20 = vmov 0.0   ;;  %vm49_vm1 = vcmask 457728  }
  0x15   :  { %31 = vperm.xlu0 %1528, %v26_v1   ;;  %v27_v6 = vld [vmem:[%s1803_s0 + $0x8] sm:$0xff]  ;;  %v1428_v7 = vpack.c.bf16 %v43_v3, %v42_v2  ;;  %v1432_v8 = vpack.c.bf16 %v45_v5, %v44_v4  ;;  %v46_v9 = vld [vmem:[#allocation2 + $0x20] sm:$0xff]  ;;  %v131_v11 = vld [vmem:[#allocation2 + $0x38] sm:$0xff]  ;;  %1335 = vmatprep.mubr.msk.f32.mxu1 %vm1630_vm0, %v1631_v20  ;;  %v29_v22 = vand.u32 127, %v28_v21  ;;  %s1632_s0 = smov 64   ;;  %s1633_s1 = smov 32  }
  0x16   :  { %v47_v10 = vld [vmem:[#allocation2 + $0x28] sm:$0xff]  ;;  %v132_v12 = vld [vmem:[#allocation2 + $0x40] sm:$0xff]  ;;  %v134_v17 = vld [vmem:[#allocation2 + $0x50] sm:$0xff]  ;;  %vm135_vm4 = vcmask 261120   ;;  %s1634_s27 = smov [#allocation5]  }
  0x17   :  { %1429 = vmatprep.subr.bf16.mxu0 %v1428_v7  ;;  %v1668_v13 = vpack.c.bf16 %v132_v12, %v131_v11  ;;  %v1436_v14 = vpack.c.bf16 %v47_v10, %v46_v9  ;;  %v133_v16 = vld [vmem:[#allocation2 + $0x48] sm:$0xff]  ;;  %v48_v19 = vld [vmem:[#allocation2 + $0x30] sm:$0xff]  ;;  %s1169_s28 = sshll.u32 %s1634_s27, 4  ;;  %s1170_s28 = int_to_ptr.vmem [resolvable:$true] %s1169_s28 }
  0x18   :  { %1431 = vmatpush3.bf16.msra.mxu0 %v1428_v7  ;;  %v1673_v18 = vpack.c.bf16 %v134_v17, %v133_v16  ;;  %s1599_s29 = scalar_lea.vmem %s1170_s28, 32  ;;  %p1604_p9 = scmp.lt.s32.totalorder %s1170_s28, %s1170_s28 }
  0x19   :  { %34 = vperm.xlu0 %1528, %v27_v6   ;;  %1433 = vmatprep.subr.bf16.mxu0 %v1432_v8  ;;  %p1600_p8 = scmp.ne.s32.totalorder %s1170_s28, %s1599_s29  ;;  %p1605_p10 = scmp.lt.s32.totalorder %s1599_s29, %s1599_s29 }
  0x1a   :  { %1460 = vmatpush3.bf16.msra.mxu1 %v1668_v13 }
  0x1b   :  { %1461 = vmatprep.subr.bf16.mxu1 %v1629_v15  ;;  %p1606_p11 = por %p1605_p10, %p1604_p9 }
  0x1c   :  { %1435 = vmatpush3.bf16.msra.mxu0 %v1432_v8 }
  0x1d   :  { %1437 = vmatprep.subr.bf16.mxu0 %v1436_v14  ;;  %p1607_p12 = pnand %p1606_p11, %p1600_p8 }
  0x1e   :  { %1463 = vmatpush3.bf16.msra.mxu1 %v1673_v18 }
  0x1f   :  { %1470 = vmatprep.subr.bf16.mxu1 %v1629_v15 }
  0x20   :  { %1439 = vmatpush3.bf16.msra.mxu0 %v1436_v14 }
  0x21   :  { %1289 = vmatprep.subr.mxu0 %v48_v19 }
  0x24   :  { %1290 = vmatpush3.msra.mxu0 %v48_v19 }
  0x25   :  { %1440 = vmatprep.subr.bf16.mxu0 %v1629_v15 }
  0x94   :  { %v32_v23 = vpop.permute.xlu0 %31 }
  0x95   :  { %vm36_vm2 = vcmp.eq.s32.totalorder %v29_v22, %v32_v23 }
  0x96   :  { %v1178_v24 = vsel %vm36_vm2, 1.0, %v1631_v20 }
  0x97   :  { %1291 = vmatprep.mubr.msk.f32.mxu0 %vm49_vm1, %v1178_v24 }
  0x98   :  { %v35_v25 = vpop.permute.xlu0 %34 }
  0x99   :  { %vm37_vm3 = vcmp.eq.s32.totalorder %v29_v22, %v35_v25 }
  0x9a   :  { %v1179_v26 = vsel %vm37_vm3, 1.0, %v1631_v20 }
  0x9b   :  { %1292 = vmatmul.mubr.msk.f32.vlgmr.msra.gmra.mrb[0].mxu0 %vm49_vm1, %v1179_v26 }
  0x9c   :  { %1442 = vmatpush3.bf16.msra.mxu0 %v1668_v13  ;;  %1302 = vmatprep.mubr.msk.f32.mxu0 %vm1630_vm0, %v1631_v20 }
  0x9d   :  { %1443 = vmatprep.subr.bf16.mxu0 %v1629_v15 }
  0xa0   :  { %1445 = vmatpush3.bf16.msra.mxu0 %v1673_v18 }
  0xa1   :  { %1446 = vmatprep.subr.bf16.mxu0 %v1629_v15 }
  0xa3   :  { %1303 = vmatmul.mubr.f32.vlgmr.msra.gmra.mrb[2].mxu0 %v1631_v20 }
  0xa4   :  { %1448 = vmatpush3.bf16.msra.mxu0 %v1668_v13  ;;  %1313 = vmatprep.mubr.msk.f32.mxu0 %vm1630_vm0, %v1631_v20 }
  0xa5   :  { %1449 = vmatprep.subr.bf16.mxu0 %v1629_v15 }
  0xa8   :  { %1451 = vmatpush3.bf16.msra.mxu0 %v1673_v18 }
  0xa9   :  { %1452 = vmatprep.subr.bf16.mxu0 %v1629_v15 }
 0x16e   :  { %v1696_v27 = vpop.f32.mrb[0].mxu0 }
 0x16f   :  { %v1698_v28 = vpop.f32.mrb[1].mxu0 }
 0x176   :  { %v205_v29 = vpop.f32.mrb[2].mxu0 }
 0x177   :  { %v210_v30 = vrot.slane %v205_v29, 2  ;;  %v1304_v31 = vpop.f32.mrb[3].mxu0 }
 0x179   :  { %v212_v32 = vadd.f32 %v1696_v27, %v210_v30 }
 0x17b   :  { %v1182_v33 = vmul.f32 -1.442695, %v212_v32 }
 0x17d   :  { %1529 = vpow2.f32 %v1182_v33 }
 0x187   :  { %v1530_v34 = vpop.eup %1529 }
 0x188   :  { %v216_v35 = vadd.f32 1.0, %v1530_v34 }
 0x18a   :  { %1531 = vrcp.f32 %v216_v35 }
 0x194   :  { %v1532_v36 = vpop.eup %1531 }
 0x195   :  { %v219_v37 = vmul.f32 2.0, %v1532_v36  ;;  %v221_v41 = vmul.f32 0.0, %v1532_v36 }
 0x197   :  { %v1183_v38 = vadd.f32 -1.0, %v219_v37 }
 0x199   :  { %223 = vrot.lane.b32.xlu1 %v1183_v38, %s1632_s0 }
 0x20b   :  { %v224_v39 = vpop.permute.xlu1 %223 }
 0x20c   :  { %v226_v40 = vmul.f32 %v1532_v36, %v224_v39 }
 0x20e   :  { %228 = vrot.lane.b32.xlu1 %v226_v40, %s1633_s1 }
 0x280   :  { %v229_v42 = vpop.permute.xlu1 %228 }
 0x281   :  { %v231_v43 = vadd.f32 %v229_v42, %v221_v41 }
 0x283   :  { %1533 = vtanh.f32 %v231_v43  ;;  %v327_v61 = vrot.slane %v231_v43, 2 }
 0x28d   :  { %v1534_v44 = vpop.eup %1533 }
 0x28e   :  { %234 = vrot.lane.b32.xlu0 %v1534_v44, %s1632_s0 }
 0x300   :  { %v235_v45 = vpop.permute.xlu0 %234 }
 0x301   :  { %v237_v46 = vmul.f32 %v1532_v36, %v235_v45 }
 0x303   :  { %v239_v47 = vrot.slane %v237_v46, 6 }
 0x305   :  { %240 = vrot.lane.b32.xlu1 %v239_v47, %s1633_s1 }
 0x377   :  { %v241_v48 = vpop.permute.xlu1 %240 }
 0x378   :  { %1314 = vmatmul.mubr.msk.f32.vlgmr.msra.gmra.mrb[4].mxu0 %vm135_vm4, %v241_v48 }
 0x379   :  { %1454 = vmatpush3.bf16.msra.mxu0 %v1668_v13  ;;  %1324 = vmatprep.mubr.msk.f32.mxu0 %vm1630_vm0, %v1631_v20 }
 0x37a   :  { %1455 = vmatprep.subr.bf16.mxu0 %v1629_v15 }
 0x37d   :  { %1457 = vmatpush3.bf16.msra.mxu0 %v1673_v18 }
 0x37e   :  { %1464 = vmatprep.subr.bf16.mxu0 %v1629_v15 }
 0x44b   :  { %v310_v49 = vpop.f32.mrb[4].mxu0 }
 0x44c   :  { %v315_v50 = vrot.slane %v310_v49, 4  ;;  %v1315_v51 = vpop.f32.mrb[5].mxu0 }
 0x44e   :  { %v317_v52 = vadd.f32 %v1696_v27, %v315_v50 }
 0x450   :  { %v1185_v53 = vmul.f32 -1.442695, %v317_v52 }
 0x452   :  { %1535 = vpow2.f32 %v1185_v53 }
 0x45c   :  { %v1536_v54 = vpop.eup %1535 }
 0x45d   :  { %v321_v55 = vadd.f32 1.0, %v1536_v54 }
 0x45f   :  { %1537 = vrcp.f32 %v321_v55 }
 0x469   :  { %v1538_v56 = vpop.eup %1537 }
 0x46a   :  { %v324_v57 = vmul.f32 2.0, %v1538_v56  ;;  %v329_v62 = vmul.f32 %v1538_v56, %v327_v61 }
 0x46c   :  { %v1186_v58 = vadd.f32 -1.0, %v324_v57 }
 0x46e   :  { %331 = vrot.lane.b32.xlu0 %v1186_v58, %s1632_s0 }
 0x4e0   :  { %v332_v59 = vpop.permute.xlu0 %331 }
 0x4e1   :  { %v334_v60 = vmul.f32 %v1538_v56, %v332_v59 }
 0x4e3   :  { %336 = vrot.lane.b32.xlu1 %v334_v60, %s1633_s1 }
 0x555   :  { %v337_v63 = vpop.permute.xlu1 %336 }
 0x556   :  { %v339_v0 = vadd.f32 %v337_v63, %v329_v62 }
 0x558   :  { %1539 = vtanh.f32 %v339_v0  ;;  %v435_v23 = vrot.slane %v339_v0, 2 }
 0x562   :  { %v1540_v1 = vpop.eup %1539 }
 0x563   :  { %342 = vrot.lane.b32.xlu0 %v1540_v1, %s1632_s0 }
 0x5d5   :  { %v343_v2 = vpop.permute.xlu0 %342 }
 0x5d6   :  { %v345_v3 = vmul.f32 %v1538_v56, %v343_v2 }
 0x5d8   :  { %v347_v4 = vrot.slane %v345_v3, 4 }
 0x5da   :  { %348 = vrot.lane.b32.xlu1 %v347_v4, %s1633_s1 }
 0x64c   :  { %v349_v5 = vpop.permute.xlu1 %348 }
 0x64d   :  { %1325 = vmatmul.mubr.msk.f32.vlgmr.msra.gmra.mrb[6].mxu0 %vm135_vm4, %v349_v5 }
 0x64e   :  { %1466 = vmatpush3.bf16.msra.mxu0 %v1668_v13  ;;  %1346 = vmatprep.mubr.msk.f32.mxu0 %vm1630_vm0, %v1631_v20 }
 0x64f   :  { %1467 = vmatprep.subr.bf16.mxu0 %v1629_v15 }
 0x652   :  { %1469 = vmatpush3.bf16.msra.mxu0 %v1673_v18 }
 0x653   :  { %1476 = vmatprep.subr.bf16.mxu0 %v1629_v15 }
 0x720   :  { %v418_v6 = vpop.f32.mrb[6].mxu0 }
 0x721   :  { %v423_v7 = vrot.slane %v418_v6, 6  ;;  %v1326_v8 = vpop.f32.mrb[7].mxu0 }
 0x723   :  { %v425_v9 = vadd.f32 %v1696_v27, %v423_v7 }
 0x725   :  { %v1188_v10 = vmul.f32 -1.442695, %v425_v9 }
 0x727   :  { %1541 = vpow2.f32 %v1188_v10 }
 0x731   :  { %v1542_v11 = vpop.eup %1541 }
 0x732   :  { %v429_v12 = vadd.f32 1.0, %v1542_v11 }
 0x734   :  { %1543 = vrcp.f32 %v429_v12 }
 0x73e   :  { %v1544_v14 = vpop.eup %1543 }
 0x73f   :  { %v432_v16 = vmul.f32 2.0, %v1544_v14  ;;  %v437_v24 = vmul.f32 %v1544_v14, %v435_v23 }
 0x741   :  { %v1189_v17 = vadd.f32 -1.0, %v432_v16 }
 0x743   :  { %439 = vrot.lane.b32.xlu0 %v1189_v17, %s1632_s0 }
 0x7b5   :  { %v440_v19 = vpop.permute.xlu0 %439 }
 0x7b6   :  { %v442_v22 = vmul.f32 %v1544_v14, %v440_v19 }
 0x7b8   :  { %444 = vrot.lane.b32.xlu1 %v442_v22, %s1633_s1 }
 0x82a   :  { %v445_v25 = vpop.permute.xlu1 %444 }
 0x82b   :  { %v447_v26 = vadd.f32 %v445_v25, %v437_v24 }
 0x82d   :  { %1545 = vtanh.f32 %v447_v26  ;;  %v540_v45 = vrot.slane %v447_v26, 2 }
 0x837   :  { %v1546_v29 = vpop.eup %1545 }
 0x838   :  { %450 = vrot.lane.b32.xlu0 %v1546_v29, %s1632_s0 }
 0x8aa   :  { %v451_v30 = vpop.permute.xlu0 %450 }
 0x8ab   :  { %v453_v31 = vmul.f32 %v1544_v14, %v451_v30 }
 0x8ad   :  { %v455_v32 = vrot.slane %v453_v31, 2 }
 0x8af   :  { %456 = vrot.lane.b32.xlu1 %v455_v32, %s1633_s1 }
 0x921   :  { %v457_v33 = vpop.permute.xlu1 %456 }
 0x922   :  { %1336 = vmatmul.mubr.msk.f32.vlgmr.msra.gmra.mrb[0].mxu1 %vm135_vm4, %v457_v33 }
 0x923   :  { %1472 = vmatpush3.bf16.msra.mxu1 %v1668_v13  ;;  %1357 = vmatprep.mubr.msk.f32.mxu1 %vm1630_vm0, %v1631_v20 }
 0x924   :  { %1473 = vmatprep.subr.bf16.mxu1 %v1629_v15 }
 0x927   :  { %1475 = vmatpush3.bf16.msra.mxu1 %v1673_v18 }
 0x928   :  { %1482 = vmatprep.subr.bf16.mxu1 %v1629_v15 }
 0x9f5   :  { %v526_v34 = vpop.f32.mrb[0].mxu1 }
 0x9f6   :  { %v530_v35 = vadd.f32 %v1696_v27, %v526_v34  ;;  %v1337_v36 = vpop.f32.mrb[1].mxu1 }
 0x9f8   :  { %v1191_v37 = vmul.f32 -1.442695, %v530_v35 }
 0x9fa   :  { %1547 = vpow2.f32 %v1191_v37 }
 0xa04   :  { %v1548_v38 = vpop.eup %1547 }
 0xa05   :  { %v534_v39 = vadd.f32 1.0, %v1548_v38 }
 0xa07   :  { %1549 = vrcp.f32 %v534_v39 }
 0xa11   :  { %v1550_v40 = vpop.eup %1549 }
 0xa12   :  { %v537_v41 = vmul.f32 2.0, %v1550_v40  ;;  %v542_v46 = vmul.f32 %v1550_v40, %v540_v45 }
 0xa14   :  { %v1192_v42 = vadd.f32 -1.0, %v537_v41 }
 0xa16   :  { %544 = vrot.lane.b32.xlu0 %v1192_v42, %s1632_s0 }
 0xa88   :  { %v545_v43 = vpop.permute.xlu0 %544 }
 0xa89   :  { %v547_v44 = vmul.f32 %v1550_v40, %v545_v43 }
 0xa8b   :  { %549 = vrot.lane.b32.xlu1 %v547_v44, %s1633_s1 }
 0xafd   :  { %v550_v47 = vpop.permute.xlu1 %549 }
 0xafe   :  { %v552_v48 = vadd.f32 %v550_v47, %v542_v46 }
 0xb00   :  { %1551 = vtanh.f32 %v552_v48  ;;  %v647_v0 = vrot.slane %v552_v48, 2 }
 0xb0a   :  { %v1552_v27 = vpop.eup %1551 }
 0xb0b   :  { %555 = vrot.lane.b32.xlu0 %v1552_v27, %s1632_s0 }
 0xb7d   :  { %v556_v49 = vpop.permute.xlu0 %555 }
 0xb7e   :  { %v558_v50 = vmul.f32 %v1550_v40, %v556_v49 }
 0xb80   :  { %560 = vrot.lane.b32.xlu1 %v558_v50, %s1633_s1 }
 0xbf2   :  { %v561_v51 = vpop.permute.xlu1 %560 }
 0xbf3   :  { %1347 = vmatmul.mubr.msk.f32.vlgmr.msra.gmra.mrb[8].mxu0 %vm135_vm4, %v561_v51 }
 0xbf4   :  { %1478 = vmatpush3.bf16.msra.mxu0 %v1668_v13  ;;  %1368 = vmatprep.mubr.msk.f32.mxu0 %vm1630_vm0, %v1631_v20 }
 0xbf5   :  { %1479 = vmatprep.subr.bf16.mxu0 %v1629_v15 }
 0xbf8   :  { %1481 = vmatpush3.bf16.msra.mxu0 %v1673_v18 }
 0xbf9   :  { %1488 = vmatprep.subr.bf16.mxu0 %v1629_v15 }
 0xcc6   :  { %v630_v52 = vpop.f32.mrb[8].mxu0 }
 0xcc7   :  { %v635_v53 = vrot.slane %v630_v52, 2  ;;  %v1348_v54 = vpop.f32.mrb[9].mxu0 }
 0xcc9   :  { %v637_v55 = vadd.f32 %v635_v53, %v1698_v28 }
 0xccb   :  { %v1194_v56 = vmul.f32 -1.442695, %v637_v55 }
 0xccd   :  { %1553 = vpow2.f32 %v1194_v56 }
 0xcd7   :  { %v1554_v57 = vpop.eup %1553 }
 0xcd8   :  { %v641_v58 = vadd.f32 1.0, %v1554_v57 }
 0xcda   :  { %1555 = vrcp.f32 %v641_v58 }
 0xce4   :  { %v1556_v59 = vpop.eup %1555 }
 0xce5   :  { %v644_v60 = vmul.f32 2.0, %v1556_v59  ;;  %v649_v1 = vmul.f32 %v1556_v59, %v647_v0 }
 0xce7   :  { %v1195_v61 = vadd.f32 -1.0, %v644_v60 }
 0xce9   :  { %651 = vrot.lane.b32.xlu0 %v1195_v61, %s1632_s0 }
 0xd5b   :  { %v652_v62 = vpop.permute.xlu0 %651 }
 0xd5c   :  { %v654_v63 = vmul.f32 %v1556_v59, %v652_v62 }
 0xd5e   :  { %656 = vrot.lane.b32.xlu1 %v654_v63, %s1633_s1 }
 0xdd0   :  { %v657_v2 = vpop.permute.xlu1 %656 }
 0xdd1   :  { %v659_v3 = vadd.f32 %v657_v2, %v649_v1 }
 0xdd3   :  { %1557 = vtanh.f32 %v659_v3 }
 0xddd   :  { %v1558_v4 = vpop.eup %1557 }
 0xdde   :  { %662 = vrot.lane.b32.xlu0 %v1558_v4, %s1632_s0 }
 0xe50   :  { %v663_v5 = vpop.permute.xlu0 %662 }
 0xe51   :  { %v665_v6 = vmul.f32 %v1556_v59, %v663_v5  ;;  %v989_v5 = vld [vmem:[#allocation2 + $0x60] sm:$0xff] }
 0xe53   :  { %v667_v7 = vrot.slane %v665_v6, 6  ;;  %v990_v6 = vld [vmem:[#allocation2 + $0x68] sm:$0xff] }
 0xe55   :  { %668 = vrot.lane.b32.xlu1 %v667_v7, %s1633_s1 }
 0xec7   :  { %v669_v8 = vpop.permute.xlu1 %668 }
 0xec8   :  { %1358 = vmatmul.mubr.msk.f32.vlgmr.msra.gmra.mrb[2].mxu1 %vm135_vm4, %v669_v8  ;;  %v991_v8 = vld [vmem:[#allocation2 + $0x70] sm:$0xff] }
 0xec9   :  { %1484 = vmatpush3.bf16.msra.mxu1 %v1668_v13  ;;  %1379 = vmatprep.mubr.msk.f32.mxu1 %vm1630_vm0, %v1631_v20 }
 0xeca   :  { %1485 = vmatprep.subr.bf16.mxu1 %v1629_v15 }
 0xecd   :  { %1487 = vmatpush3.bf16.msra.mxu1 %v1673_v18  ;;  %v755_v18 = vrot.slane %v659_v3, 2 }
 0xece   :  { %1494 = vmatprep.subr.bf16.mxu1 %v1629_v15 }
 0xf9b   :  { %v738_v9 = vpop.f32.mrb[2].mxu1 }
 0xf9c   :  { %v743_v10 = vrot.slane %v738_v9, 4  ;;  %v1359_v11 = vpop.f32.mrb[3].mxu1  ;;  %v1492_v9 = vpack.c.bf16 %v991_v8, %v990_v6 }
 0xf9d   :  { %v1072_v11 = vld [vmem:[#allocation2 + $0x80] sm:$0xff] }
 0xf9e   :  { %v745_v12 = vadd.f32 %v743_v10, %v1698_v28 }
 0xfa0   :  { %v1197_v14 = vmul.f32 -1.442695, %v745_v12  ;;  %v1073_v12 = vld [vmem:[#allocation2 + $0x88] sm:$0xff] }
 0xfa2   :  { %1559 = vpow2.f32 %v1197_v14  ;;  %v1074_v14 = vld [vmem:[#allocation2 + $0x90] sm:$0xff] }
 0xfac   :  { %v1560_v16 = vpop.eup %1559 }
 0xfad   :  { %v749_v17 = vadd.f32 1.0, %v1560_v16  ;;  %v1495_v16 = vpack.c.bf16 %v1073_v12, %v1072_v11 }
 0xfaf   :  { %1561 = vrcp.f32 %v749_v17  ;;  %v1075_v17 = vld [vmem:[#allocation2 + $0x98] sm:$0xff] }
 0xfb9   :  { %v1562_v13 = vpop.eup %1561 }
 0xfba   :  { %v752_v19 = vmul.f32 2.0, %v1562_v13  ;;  %v757_v25 = vmul.f32 %v1562_v13, %v755_v18  ;;  %v1079_v18 = vld [vmem:[#allocation2 + $0xb8] sm:$0xff] }
 0xfbc   :  { %v1198_v22 = vadd.f32 -1.0, %v752_v19  ;;  %v1076_v19 = vld [vmem:[#allocation2 + $0xa0] sm:$0xff] }
 0xfbe   :  { %759 = vrot.lane.b32.xlu0 %v1198_v22, %s1632_s0  ;;  %v1077_v22 = vld [vmem:[#allocation2 + $0xa8] sm:$0xff] }
0x1030   :  { %v760_v23 = vpop.permute.xlu0 %759 }
0x1031   :  { %v762_v24 = vmul.f32 %v1562_v13, %v760_v23  ;;  %v1501_v23 = vpack.c.bf16 %v1077_v22, %v1076_v19 }
0x1033   :  { %764 = vrot.lane.b32.xlu1 %v762_v24, %s1633_s1  ;;  %v1078_v24 = vld [vmem:[#allocation2 + $0xb0] sm:$0xff] }
0x10a5   :  { %v765_v26 = vpop.permute.xlu1 %764 }
0x10a6   :  { %v767_v29 = vadd.f32 %v765_v26, %v757_v25 }
0x10a8   :  { %1563 = vtanh.f32 %v767_v29  ;;  %v863_v47 = vrot.slane %v767_v29, 2  ;;  %v1504_v29 = vpack.c.bf16 %v1079_v18, %v1078_v24 }
0x10b2   :  { %v1564_v30 = vpop.eup %1563 }
0x10b3   :  { %770 = vrot.lane.b32.xlu0 %v1564_v30, %s1632_s0  ;;  %v1080_v30 = vld [vmem:[#allocation2 + $0xc0] sm:$0xff] }
0x1125   :  { %v771_v31 = vpop.permute.xlu0 %770 }
0x1126   :  { %v773_v32 = vmul.f32 %v1562_v13, %v771_v31  ;;  %v1498_v13 = vpack.c.bf16 %v1075_v17, %v1074_v14  ;;  %v1081_v31 = vld [vmem:[#allocation2 + $0xc8] sm:$0xff] }
0x1128   :  { %v775_v33 = vrot.slane %v773_v32, 4  ;;  %v1507_v32 = vpack.c.bf16 %v1081_v31, %v1080_v30 }
0x112a   :  { %776 = vrot.lane.b32.xlu1 %v775_v33, %s1633_s1  ;;  %v1082_v33 = vld [vmem:[#allocation2 + $0xd0] sm:$0xff] }
0x119c   :  { %v777_v34 = vpop.permute.xlu1 %776 }
0x119d   :  { %1369 = vmatmul.mubr.msk.f32.vlgmr.msra.gmra.mrb[10].mxu0 %vm135_vm4, %v777_v34  ;;  %v1083_v34 = vld [vmem:[#allocation2 + $0xd8] sm:$0xff] }
0x119e   :  { %1390 = vmatprep.mubr.msk.f32.mxu0 %vm1630_vm0, %v1631_v20 }
0x1270   :  { %v846_v35 = vpop.f32.mrb[10].mxu0 }
0x1271   :  { %v851_v36 = vrot.slane %v846_v35, 6  ;;  %v1370_v37 = vpop.f32.mrb[11].mxu0  ;;  %v1510_v35 = vpack.c.bf16 %v1083_v34, %v1082_v33 }
0x1272   :  { %v1085_v37 = vld [vmem:[#allocation2 + $0xe8] sm:$0xff] }
0x1273   :  { %v853_v38 = vadd.f32 %v851_v36, %v1698_v28  ;;  %v1084_v36 = vld [vmem:[#allocation2 + $0xe0] sm:$0xff] }
0x1275   :  { %v1200_v39 = vmul.f32 -1.442695, %v853_v38  ;;  %v1513_v38 = vpack.c.bf16 %v1085_v37, %v1084_v36 }
0x1277   :  { %1565 = vpow2.f32 %v1200_v39 }
0x1281   :  { %v1566_v40 = vpop.eup %1565 }
0x1282   :  { %v857_v41 = vadd.f32 1.0, %v1566_v40  ;;  %v1086_v40 = vld [vmem:[#allocation2 + $0xf0] sm:$0xff] }
0x1284   :  { %1567 = vrcp.f32 %v857_v41  ;;  %v1087_v41 = vld [vmem:[#allocation2 + $0xf8] sm:$0xff] }
0x128e   :  { %v1568_v42 = vpop.eup %1567 }
0x128f   :  { %v860_v43 = vmul.f32 2.0, %v1568_v42  ;;  %v865_v48 = vmul.f32 %v1568_v42, %v863_v47 }
0x1291   :  { %v1201_v44 = vadd.f32 -1.0, %v860_v43  ;;  %v993_v43 = vshrl.u32 %v28_v21, 7 }
0x1293   :  { %867 = vrot.lane.b32.xlu0 %v1201_v44, %s1632_s0  ;;  %v994_v44 = vsub.s32 0, %v993_v43 }
0x1305   :  { %v868_v45 = vpop.permute.xlu0 %867 }
0x1306   :  { %v870_v46 = vmul.f32 %v1568_v42, %v868_v45  ;;  %v987_v45 = vld [vmem:[#allocation2 + $0x78] sm:$0xff] }
0x1308   :  { %872 = vrot.lane.b32.xlu1 %v870_v46, %s1633_s1  ;;  %v995_v46 = vrot.slane %v987_v45, %v994_v44 }
0x137a   :  { %v873_v27 = vpop.permute.xlu1 %872 }
0x137b   :  { %v875_v49 = vadd.f32 %v873_v27, %v865_v48 }
0x137d   :  { %1569 = vtanh.f32 %v875_v49  ;;  %v968_v2 = vrot.slane %v875_v49, 2 }
0x1387   :  { %v1570_v50 = vpop.eup %1569 }
0x1388   :  { %878 = vrot.lane.b32.xlu0 %v1570_v50, %s1632_s0  ;;  %v1090_v50 = vsub.s32 1, %v993_v43 }
0x13fa   :  { %v879_v51 = vpop.permute.xlu0 %878 }
0x13fb   :  { %v881_v52 = vmul.f32 %v1568_v42, %v879_v51  ;;  %v1516_v42 = vpack.c.bf16 %v1087_v41, %v1086_v40  ;;  %v1091_v51 = vrot.slane %v987_v45, %v1090_v50 }
0x13fd   :  { %v883_v53 = vrot.slane %v881_v52, 2 }
0x13ff   :  { %884 = vrot.lane.b32.xlu1 %v883_v53, %s1633_s1 }
0x1471   :  { %v885_v54 = vpop.permute.xlu1 %884 }
0x1472   :  { %1380 = vmatmul.mubr.msk.f32.vlgmr.msra.gmra.mrb[4].mxu1 %vm135_vm4, %v885_v54 }
0x1473   :  { %1425 = vmatprep.mubr.msk.f32.mxu1 %vm1630_vm0, %v1631_v20  ;;  %1496 = vmatpush3.bf16.msra.mxu1 %v1495_v16 }
0x1474   :  { %1497 = vmatprep.subr.bf16.mxu1 %v1629_v15 }
0x1477   :  { %1499 = vmatpush3.bf16.msra.mxu1 %v1498_v13 }
0x1478   :  { %1500 = vmatprep.subr.bf16.mxu1 %v1629_v15 }
0x147b   :  { %1502 = vmatpush3.bf16.msra.mxu1 %v1501_v23 }
0x147c   :  { %1503 = vmatprep.subr.bf16.mxu1 %v1629_v15 }
0x147f   :  { %1505 = vmatpush3.bf16.msra.mxu1 %v1504_v29 }
0x1480   :  { %1506 = vmatprep.subr.bf16.mxu1 %v1629_v15 }
0x1483   :  { %1508 = vmatpush3.bf16.msra.mxu1 %v1507_v32 }
0x1484   :  { %1509 = vmatprep.subr.bf16.mxu1 %v1629_v15 }
0x1487   :  { %1511 = vmatpush3.bf16.msra.mxu1 %v1510_v35 }
0x1488   :  { %1512 = vmatprep.subr.bf16.mxu1 %v1629_v15 }
0x148b   :  { %1514 = vmatpush3.bf16.msra.mxu1 %v1513_v38 }
0x148c   :  { %1515 = vmatprep.subr.bf16.mxu1 %v1629_v15 }
0x148f   :  { %1517 = vmatpush3.bf16.msra.mxu1 %v1516_v42 }
0x1545   :  { %v954_v55 = vpop.f32.mrb[4].mxu1 }
0x1546   :  { %v958_v56 = vadd.f32 %v954_v55, %v1698_v28  ;;  %v1381_v57 = vpop.f32.mrb[5].mxu1  ;;  %v988_v28 = vld [vmem:[#allocation2 + $0x58] sm:$0xff] }
0x1547   :  { %v1489_v7 = vpack.c.bf16 %v989_v5, %v988_v28 }
0x1548   :  { %v1203_v58 = vmul.f32 -1.442695, %v958_v56 }
0x1549   :  { %1490 = vmatpush3.bf16.msra.mxu0 %v1489_v7 }
0x154a   :  { %1571 = vpow2.f32 %v1203_v58  ;;  %1491 = vmatprep.subr.bf16.mxu0 %v1629_v15 }
0x154d   :  { %1493 = vmatpush3.bf16.msra.mxu0 %v1492_v9 }
0x1554   :  { %v1572_v59 = vpop.eup %1571 }
0x1555   :  { %v962_v60 = vadd.f32 1.0, %v1572_v59 }
0x1557   :  { %1573 = vrcp.f32 %v962_v60 }
0x1561   :  { %v1574_v61 = vpop.eup %1573 }
0x1562   :  { %v965_v62 = vmul.f32 2.0, %v1574_v61  ;;  %v970_v20 = vmul.f32 %v1574_v61, %v968_v2 }
0x1564   :  { %v1204_v63 = vadd.f32 -1.0, %v965_v62 }
0x1566   :  { %972 = vrot.lane.b32.xlu0 %v1204_v63, %s1632_s0 }
0x15d8   :  { %v973_v0 = vpop.permute.xlu0 %972 }
0x15d9   :  { %v975_v1 = vmul.f32 %v1574_v61, %v973_v0 }
0x15db   :  { %977 = vrot.lane.b32.xlu1 %v975_v1, %s1633_s1 }
0x164d   :  { %v978_v3 = vpop.permute.xlu1 %977 }
0x164e   :  { %v980_v4 = vadd.f32 %v978_v3, %v970_v20 }
0x1650   :  { %1575 = vtanh.f32 %v980_v4 }
0x165a   :  { %v1576_v10 = vpop.eup %1575 }
0x165b   :  { %983 = vrot.lane.b32.xlu0 %v1576_v10, %s1632_s0 }
0x16cd   :  { %v984_v25 = vpop.permute.xlu0 %983 }
0x16ce   :  { %v986_v26 = vmul.f32 %v1574_v61, %v984_v25 }
0x16d0   :  { %997 = vrot.lane.b32.xlu1 %v986_v26, %s1633_s1 }
0x1742   :  { %v998_v39 = vpop.permute.xlu1 %997 }
0x1743   :  { %1391 = vmatmul.mubr.msk.f32.vlgmr.msra.gmra.mrb[12].mxu0 %vm135_vm4, %v998_v39 }
0x1816   :  { %v1067_v47 = vpop.f32.mrb[12].mxu0 }
0x1817   :  { %v1068_v48 = vadd.f32 %v1067_v47, %v995_v46  ;;  %v1392_v27 = vpop.f32.mrb[13].mxu0 }
0x1819   :  { %v1071_v49 = vmax.f32 %v1068_v48, 0.0 }
0x181b   :  { %1426 = vmatmul.mubr.f32.vlgmr.msra.gmra.mrb[6].mxu1 %v1071_v49 }
0x18ee   :  { %v1158_v15 = vpop.f32.mrb[6].mxu1 }
0x18ef   :  { %v1159_v52 = vadd.f32 %v1158_v15, %v1091_v51  ;;  %v1427_v53 = vpop.f32.mrb[7].mxu1 }
0x18f1   :  { %1162 = vst [vmem:[#allocation5] sm:$0x3] %v1159_v52 }
0x18f2   :  { %1610 = shalt.err (!%p1607_p12)
}
0x18f3   :  { %s1611_s4 = scalar_lea.hbm %s1805_s2, 32 }
0x18f4   :  { %p1612_p13 = scmp.ne.s32.totalorder %s1805_s2, %s1611_s4  ;;  %p1615_p0 = scmp.lt.u32.totalorder %s1611_s4, %s1805_s2 }
0x18f6   :  { %p1617_p1 = pnand %p1615_p0, %p1612_p13 }
0x18f8   :  { %1620 = shalt.err (!%p1617_p1)
}
0x18f9   :  { %1172 = dma.vmem_to_hbm [thread:$0]  %s1170_s28, 32, %s1805_s2, [#allocation4]  }
0x18fa   :  { %1623 = dma.done.wait [#allocation4], 32  }
0x18fb   :  { %1624 = vsyncadd [#allocation4], 4294967264 }
0x18fc   :  { %1176 = vsyncpa [#allocation3], 1 }
0x18fd   :  { %1177 = vsyncpa [#allocation4], 1 }

</bundles_post_ra>
